<compile_context>
chip_gen: v7x
topology: tpu7x:2x2x1
jax: 0.10.0
libtpu: 0.0.40
codegen_flags: <defaults>
</compile_context>

<pallas_src>
import functools

import jax
import jax.numpy as jnp
from jax.experimental import pallas as pl
from jax.experimental.pallas import tpu as pltpu


def _round_up(x, m):
    return ((x + m - 1) // m) * m


def _dice_kernel(p_ref, t_ref, loss_ref, inter_acc, den_acc, *, eps):
    """Accumulate per-row intersection / denominator across the spatial grid
    axis; on the last spatial block emit the per-row dice loss."""
    k = pl.program_id(1)  # reduction axis over flattened spatial dim

    @pl.when(k == 0)
    def _():
        inter_acc[...] = jnp.zeros_like(inter_acc)
        den_acc[...] = jnp.zeros_like(den_acc)

    p = p_ref[...].astype(jnp.float32)
    t = t_ref[...].astype(jnp.float32)

    inter_acc[...] += jnp.sum(p * t, axis=-1, keepdims=True)
    # Fused denominator: one cross-lane reduce instead of two.
    den_acc[...] += jnp.sum(p + t, axis=-1, keepdims=True)

    @pl.when(k == pl.num_programs(1) - 1)
    def _():
        loss_ref[...] = 1.0 - 2.0 * inter_acc[...] / (den_acc[...] + eps)


def _dice_loss_ref(pred, target, weight=None, eps=1e-6):
    """Plain-JAX reference / small-problem fallback path."""
    b, c = pred.shape[0], pred.shape[1]
    p = pred.reshape(b, c, -1).astype(jnp.float32)
    t = target.reshape(b, c, -1).astype(jnp.float32)
    inter = jnp.sum(p * t, axis=-1)
    den = jnp.sum(p, axis=-1) + jnp.sum(t, axis=-1)
    if weight is None:
        loss = 1.0 - 2.0 * inter / (den + eps)
    else:
        loss = 1.0 - 2.0 * inter / (den + eps) * weight
    return jnp.mean(loss)


def dice_loss(pred, target, weight=None, eps=1e-6, force_pallas=False):
    """JAX/Pallas equivalent of DiceLoss.forward(pred, target)."""
    assert pred.shape == target.shape
    b, c = pred.shape[0], pred.shape[1]
    rows = b * c
    cols = 1
    for d in pred.shape[2:]:
        cols *= d

    # Tiny problems: pallas_call fixed overhead exceeds the work — let XLA
    # fuse the reference expression instead.
    nbytes = rows * cols * jnp.dtype(pred.dtype).itemsize
    if not force_pallas and nbytes < (1 << 21):
        return _dice_loss_ref(pred, target, weight=weight, eps=eps)

    p2 = pred.reshape(rows, cols)
    t2 = target.reshape(rows, cols)

    # --- tile selection (memory-bound streaming kernel) -------------------
    # Columns (lane axis): pad to a multiple of 128, use wide tiles so the
    # per-grid-step pipeline overhead is amortized.  Zero padding is exact:
    # padded columns contribute 0 to both sum(p*t) and sum(p+t).
    padded_cols = _round_up(cols, 128)
    tile_cols = min(2048, padded_cols)
    padded_cols = _round_up(padded_cols, tile_cols)

    # Rows (sublane axis): pad to a multiple of 8.  Cap the tile so
    # 2 inputs x 2 pipeline buffers x tile stays well under every
    # generation's scoped-VMEM default (256 x 2048 f32 => ~8 MiB total),
    # and keep >= 2 row blocks when possible so the parallel axis can shard
    # across v7x's two TensorCores.
    min_padded_rows = _round_up(rows, 8)
    tile_rows = min(256, min_padded_rows)
    if min_padded_rows // tile_rows < 2 and min_padded_rows >= 16:
        tile_rows = _round_up((min_padded_rows + 1) // 2, 8)
    padded_rows = _round_up(rows, tile_rows)

    pad_r = padded_rows - rows
    pad_c = padded_cols - cols
    if pad_r or pad_c:
        p2 = jnp.pad(p2, ((0, pad_r), (0, pad_c)))
        t2 = jnp.pad(t2, ((0, pad_r), (0, pad_c)))

    grid = (padded_rows // tile_rows, padded_cols // tile_cols)

    loss_rows = pl.pallas_call(
        functools.partial(_dice_kernel, eps=eps),
        out_shape=jax.ShapeDtypeStruct((padded_rows, 1), jnp.float32),
        grid_spec=pltpu.PrefetchScalarGridSpec(
            num_scalar_prefetch=0,
            grid=grid,
            in_specs=[
                pl.BlockSpec((tile_rows, tile_cols), lambda i, k: (i, k)),
                pl.BlockSpec((tile_rows, tile_cols), lambda i, k: (i, k)),
            ],
            out_specs=pl.BlockSpec((tile_rows, 1), lambda i, k: (i, 0)),
            scratch_shapes=[
                pltpu.VMEM((tile_rows, 1), jnp.float32),
                pltpu.VMEM((tile_rows, 1), jnp.float32),
            ],
        ),
        compiler_params=pltpu.CompilerParams(
            dimension_semantics=("parallel", "arbitrary"),
            vmem_limit_bytes=32 * 1024 * 1024,
        ),
    )(p2, t2)

    # Padded rows (if any) are dropped here so they cannot bias the mean.
    loss = loss_rows[:rows].reshape(b, c)
    if weight is not None:
        # PyTorch: loss = 1 - 2*inter/(den+eps) * weight
        # i.e. the weight scales only the dice term, not the 1.
        dice_term = 1.0 - loss  # == 2*inter/(den+eps)
        loss = 1.0 - dice_term * weight
    return jnp.mean(loss)


if __name__ == "__main__":
    key = jax.random.PRNGKey(0)
    kp, kt, kp2, kt2 = jax.random.split(key, 4)

    # --- test 1: small demo shape (forced through the Pallas kernel) ------
    B, C, H, W = 2, 4, 16, 16
    pred = jax.nn.sigmoid(jax.random.normal(kp, (B, C, H, W), dtype=jnp.float32))
    target = (jax.random.uniform(kt, (B, C, H, W)) > 0.5).astype(jnp.float32)

    out = dice_loss(pred, target, weight=None, eps=1e-6, force_pallas=True)
    out = jax.block_until_ready(out)
    ref = _dice_loss_ref(pred, target, weight=None, eps=1e-6)
    assert jnp.allclose(out, ref, atol=1e-5, rtol=1e-5), (out, ref)

    # --- test 2: non-aligned shape (exercises column + row zero padding)
    #             with a per-class weight.
    B2, C2, H2, W2 = 2, 3, 17, 19
    w = jnp.array([0.5, 1.0, 1.5], dtype=jnp.float32)
    pred2 = jax.nn.sigmoid(
        jax.random.normal(kp2, (B2, C2, H2, W2), dtype=jnp.float32))
    target2 = (jax.random.uniform(kt2, (B2, C2, H2, W2)) > 0.5).astype(jnp.float32)

    out2 = dice_loss(pred2, target2, weight=w, eps=1e-6, force_pallas=True)
    out2 = jax.block_until_ready(out2)
    ref2 = _dice_loss_ref(pred2, target2, weight=w, eps=1e-6)
    assert jnp.allclose(out2, ref2, atol=1e-5, rtol=1e-5), (out2, ref2)

    print("KERNEL_OK")
</pallas_src>

<mosaic_0001>
module attributes {stable_mosaic.version = 11 : i64} {
  func.func @_dice_kernel(%arg0: i32, %arg1: i32, %arg2: memref<8x256xf32, #tpu.memory_space<vmem>>, %arg3: memref<8x256xf32, #tpu.memory_space<vmem>>, %arg4: memref<8x1xf32, #tpu.memory_space<vmem>>, %arg5: memref<8x1xf32, #tpu.memory_space<vmem>>, %arg6: memref<8x1xf32, #tpu.memory_space<vmem>>) attributes {dimension_semantics = [#tpu.dimension_semantics<parallel>, #tpu.dimension_semantics<arbitrary>], iteration_bounds = array<i64: 1, 1>, scalar_prefetch = 0 : i64, scratch_operands = 2 : i64, tpu.core_type = #tpu.core_type<tc>, window_params = [{transform_indices = @transform_0, window_bounds = array<i64: 8, 256>}, {transform_indices = @transform_1, window_bounds = array<i64: 8, 256>}, {transform_indices = @transform_2, window_bounds = array<i64: 8, 1>}]} {
    %c0_i32 = arith.constant 0 : i32
    %0 = arith.cmpi eq, %arg1, %c0_i32 : i32
    %1 = arith.extui %0 : i1 to i32
    %c0_i32_0 = arith.constant 0 : i32
    %2 = arith.cmpi ne, %1, %c0_i32_0 : i32
    scf.if %2 {
      %cst_15 = arith.constant 0.000000e+00 : f32
      %20 = vector.broadcast %cst_15 : f32 to vector<8x1xf32>
      %c0_16 = arith.constant 0 : index
      %c0_17 = arith.constant 0 : index
      %21 = vector.load %arg5[%c0_16, %c0_17] : memref<8x1xf32, #tpu.memory_space<vmem>>, vector<8x1xf32>
      tpu.vector_store %arg5[%c0_16, %c0_17], %20 {strides = array<i32>} : memref<8x1xf32, #tpu.memory_space<vmem>>, vector<8x1xf32>,
      %cst_18 = arith.constant 0.000000e+00 : f32
      %22 = vector.broadcast %cst_18 : f32 to vector<8x1xf32>
      %c0_19 = arith.constant 0 : index
      %c0_20 = arith.constant 0 : index
      %23 = vector.load %arg6[%c0_19, %c0_20] : memref<8x1xf32, #tpu.memory_space<vmem>>, vector<8x1xf32>
      tpu.vector_store %arg6[%c0_19, %c0_20], %22 {strides = array<i32>} : memref<8x1xf32, #tpu.memory_space<vmem>>, vector<8x1xf32>,
    } else {
    }
    %c0 = arith.constant 0 : index
    %c0_1 = arith.constant 0 : index
    %3 = vector.load %arg2[%c0, %c0_1] : memref<8x256xf32, #tpu.memory_space<vmem>>, vector<8x256xf32>
    %c0_2 = arith.constant 0 : index
    %c0_3 = arith.constant 0 : index
    %4 = vector.load %arg3[%c0_2, %c0_3] : memref<8x256xf32, #tpu.memory_space<vmem>>, vector<8x256xf32>
    %c0_4 = arith.constant 0 : index
    %c0_5 = arith.constant 0 : index
    %5 = vector.load %arg5[%c0_4, %c0_5] : memref<8x1xf32, #tpu.memory_space<vmem>>, vector<8x1xf32>
    %6 = arith.mulf %3, %4 : vector<8x256xf32>
    %cst = arith.constant dense<0.000000e+00> : vector<8xf32>
    %7 = vector.multi_reduction <add>, %6, %cst [1] : vector<8x256xf32> to vector<8xf32>
    %8 = vector.shape_cast %7 : vector<8xf32> to vector<8x1xf32>
    %9 = arith.addf %5, %8 : vector<8x1xf32>
    %c0_6 = arith.constant 0 : index
    %c0_7 = arith.constant 0 : index
    %10 = vector.load %arg5[%c0_6, %c0_7] : memref<8x1xf32, #tpu.memory_space<vmem>>, vector<8x1xf32>
    tpu.vector_store %arg5[%c0_6, %c0_7], %9 {strides = array<i32>} : memref<8x1xf32, #tpu.memory_space<vmem>>, vector<8x1xf32>,
    %c0_8 = arith.constant 0 : index
    %c0_9 = arith.constant 0 : index
    %11 = vector.load %arg6[%c0_8, %c0_9] : memref<8x1xf32, #tpu.memory_space<vmem>>, vector<8x1xf32>
    %12 = arith.addf %3, %4 : vector<8x256xf32>
    %cst_10 = arith.constant dense<0.000000e+00> : vector<8xf32>
    %13 = vector.multi_reduction <add>, %12, %cst_10 [1] : vector<8x256xf32> to vector<8xf32>
    %14 = vector.shape_cast %13 : vector<8xf32> to vector<8x1xf32>
    %15 = arith.addf %11, %14 : vector<8x1xf32>
    %c0_11 = arith.constant 0 : index
    %c0_12 = arith.constant 0 : index
    %16 = vector.load %arg6[%c0_11, %c0_12] : memref<8x1xf32, #tpu.memory_space<vmem>>, vector<8x1xf32>
    tpu.vector_store %arg6[%c0_11, %c0_12], %15 {strides = array<i32>} : memref<8x1xf32, #tpu.memory_space<vmem>>, vector<8x1xf32>,
    %c0_i32_13 = arith.constant 0 : i32
    %17 = arith.cmpi eq, %arg1, %c0_i32_13 : i32
    %18 = arith.extui %17 : i1 to i32
    %c0_i32_14 = arith.constant 0 : i32
    %19 = arith.cmpi ne, %18, %c0_i32_14 : i32
    scf.if %19 {
      %c0_15 = arith.constant 0 : index
      %c0_16 = arith.constant 0 : index
      %20 = vector.load %arg5[%c0_15, %c0_16] : memref<8x1xf32, #tpu.memory_space<vmem>>, vector<8x1xf32>
      %cst_17 = arith.constant 2.000000e+00 : f32
      %21 = vector.broadcast %cst_17 : f32 to vector<8x1xf32>
      %22 = arith.mulf %21, %20 : vector<8x1xf32>
      %c0_18 = arith.constant 0 : index
      %c0_19 = arith.constant 0 : index
      %23 = vector.load %arg6[%c0_18, %c0_19] : memref<8x1xf32, #tpu.memory_space<vmem>>, vector<8x1xf32>
      %cst_20 = arith.constant 9.99999997E-7 : f32
      %24 = vector.broadcast %cst_20 : f32 to vector<8x1xf32>
      %25 = arith.addf %23, %24 : vector<8x1xf32>
      %26 = arith.divf %22, %25 : vector<8x1xf32>
      %cst_21 = arith.constant 1.000000e+00 : f32
      %27 = vector.broadcast %cst_21 : f32 to vector<8x1xf32>
      %28 = arith.subf %27, %26 : vector<8x1xf32>
      %c0_22 = arith.constant 0 : index
      %c0_23 = arith.constant 0 : index
      %29 = vector.load %arg4[%c0_22, %c0_23] : memref<8x1xf32, #tpu.memory_space<vmem>>, vector<8x1xf32>
      tpu.vector_store %arg4[%c0_22, %c0_23], %28 {strides = array<i32>} : memref<8x1xf32, #tpu.memory_space<vmem>>, vector<8x1xf32>,
    } else {
    }
    return
  }
  func.func @transform_0(%arg0: i32, %arg1: i32) -> (i32, i32) {
    %c0_i32 = arith.constant 0 : i32
    return %arg0, %arg1 : i32, i32
  }
  func.func @transform_1(%arg0: i32, %arg1: i32) -> (i32, i32) {
    %c0_i32 = arith.constant 0 : i32
    return %arg0, %arg1 : i32, i32
  }
  func.func @transform_2(%arg0: i32, %arg1: i32) -> (i32, i32) {
    %c0_i32 = arith.constant 0 : i32
    %c0_i32_0 = arith.constant 0 : i32
    return %arg0, %c0_i32 : i32, i32
  }
}

</mosaic_0001>

<bundles_post_ra>
// kernel: tpu_custom_call.1
= control target key start
LH: loop header
LB: loop body
LE: loop exit
PB: predicated region body
PF: predicated region fallthrough
CT: control target
= control target key end

     0   :  { %7 = vsyncpa [#allocation5], 0  ;;  %s183_s0 = inlined_call_operand.hbm [shape: f32[8,256], index: 0, kind: input, shape index: {}]   ;;  %s184_s1 = inlined_call_operand.hbm [shape: f32[8,256], index: 1, kind: input, shape index: {}]   ;;  %s185_s2 = inlined_call_operand.vmem [shape: f32[8,1], index: 2, kind: output, shape index: {}]  }
   0x1   :  { %8 = vsyncpa [#allocation7], 0  ;;  %s133_s9 = smov [#allocation4]   ;;  %s134_s11 = smov [#allocation6]  }
   0x2   :  { %s15_s10 = sshll.u32 %s133_s9, 4  ;;  %s25_s12 = sshll.u32 %s134_s11, 4  ;;  %s16_s10 = int_to_ptr.vmem [resolvable:$true] %s15_s10  ;;  %s26_s12 = int_to_ptr.vmem [resolvable:$true] %s25_s12 }
   0x3   :  { %s85_s15 = scalar_lea.hbm %s183_s0, 256 }
   0x4   :  { %p86_p0 = scmp.ne.s32.totalorder %s183_s0, %s85_s15  ;;  %p89_p1 = scmp.lt.u32.totalorder %s85_s15, %s183_s0 }
   0x6   :  { %p91_p2 = pnand %p89_p1, %p86_p0 }
   0x8   :  { %94 = shalt.err (!%p91_p2)
}
   0x9   :  { %s95_s20 = scalar_lea.vmem %s16_s10, 256  ;;  %p100_p4 = scmp.lt.s32.totalorder %s16_s10, %s16_s10 }
   0xa   :  { %p96_p3 = scmp.ne.s32.totalorder %s16_s10, %s95_s20  ;;  %p101_p5 = scmp.lt.s32.totalorder %s95_s20, %s95_s20 }
   0xc   :  { %p102_p6 = por %p101_p5, %p100_p4 }
   0xe   :  { %p103_p7 = pnand %p102_p6, %p96_p3 }
  0x10   :  { %106 = shalt.err (!%p103_p7)
}
  0x11   :  { %18 = dma.hbm_to_vmem [thread:$0]  %s183_s0, 256, %s16_s10, [#allocation5]  }
  0x12   :  { %s107_s25 = scalar_lea.hbm %s184_s1, 256 }
  0x13   :  { %p108_p8 = scmp.ne.s32.totalorder %s184_s1, %s107_s25  ;;  %p111_p9 = scmp.lt.u32.totalorder %s107_s25, %s184_s1 }
  0x15   :  { %p113_p10 = pnand %p111_p9, %p108_p8 }
  0x17   :  { %116 = shalt.err (!%p113_p10)
}
  0x18   :  { %s117_s30 = scalar_lea.vmem %s26_s12, 256  ;;  %p122_p12 = scmp.lt.s32.totalorder %s26_s12, %s26_s12 }
  0x19   :  { %p118_p11 = scmp.ne.s32.totalorder %s26_s12, %s117_s30  ;;  %p123_p13 = scmp.lt.s32.totalorder %s117_s30, %s117_s30 }
  0x1b   :  { %p124_p0 = por %p123_p13, %p122_p12 }
  0x1d   :  { %p125_p1 = pnand %p124_p0, %p118_p11 }
  0x1f   :  { %128 = shalt.err (!%p125_p1)
}
  0x20   :  { %28 = dma.hbm_to_vmem [thread:$0]  %s184_s1, 256, %s26_s12, [#allocation7]  }
  0x21   :  { %129 = dma.done.wait [#allocation5], 256  }
  0x22   :  { %130 = vsyncadd [#allocation5], 4294967040 }
  0x23   :  { %131 = dma.done.wait [#allocation7], 256  }
  0x24   :  { %132 = vsyncadd [#allocation7], 4294967040  ;;  %vm39_vm0 = vcmask 7168   ;;  %v135_v0 = vmov 0.0   ;;  %v42_v1 = vld [vmem:[#allocation4] sm:$0xff]  ;;  %v43_v2 = vld [vmem:[#allocation4 + $0x8] sm:$0xff] }
  0x25   :  { %41 = vst.msk [vmem:[#allocation3] sm:$0xff] %vm39_vm0, %v135_v0  ;;  %40 = vst.msk [vmem:[#allocation2] sm:$0xff] %vm39_vm0, %v135_v0  ;;  %v44_v3 = vld [vmem:[#allocation6] sm:$0xff]  ;;  %v45_v4 = vld [vmem:[#allocation6 + $0x8] sm:$0xff] }
  0x26   :  { %v56_v5 = vadd.f32 %v44_v3, %v42_v1  ;;  %v57_v6 = vadd.f32 %v45_v4, %v43_v2  ;;  %v47_v7 = vmul.f32 %v44_v3, %v42_v1  ;;  %v48_v8 = vmul.f32 %v45_v4, %v43_v2 }
  0x28   :  { %v58_v9 = vadd.f32 %v57_v6, %v56_v5  ;;  %v49_v10 = vadd.f32 %v48_v8, %v47_v7 }
  0x2a   :  { %59 = vadd.xlane.f32.xlu0 %v58_v9 }
  0x2c   :  { %v55_v11 = vld [vmem:[#allocation3] sm:$0xff]  ;;  %v46_v14 = vld [vmem:[#allocation2] sm:$0xff] }
  0x2e   :  { %50 = vadd.xlane.f32.xlu0 %v49_v10 }
  0xb7   :  { %v60_v12 = vpop.xlane.xlu0 %59 }
  0xb8   :  { %v61_v13 = vadd.f32 %v60_v12, %v55_v11 }
  0xba   :  { %62 = vst.msk [vmem:[#allocation3] sm:$0xff] %vm39_vm0, %v61_v13 }
  0xbb   :  { %v51_v15 = vpop.xlane.xlu0 %50 }
  0xbc   :  { %v52_v16 = vadd.f32 %v51_v15, %v46_v14 }
  0xbe   :  { %54 = vst.msk [vmem:[#allocation2] sm:$0xff] %vm39_vm0, %v52_v16 }
  0xc1   :  { %v68_v17 = vld [vmem:[#allocation3] sm:$0xff] }
  0xc2   :  { %v69_v18 = vadd.f32 1e-06, %v68_v17 }
  0xc4   :  { %83 = vrcp.f32 %v69_v18 }
  0xc5   :  { %v66_v19 = vld [vmem:[#allocation2] sm:$0xff] }
  0xc6   :  { %v67_v20 = vmul.f32 2.0, %v66_v19 }
  0xce   :  { %v84_v21 = vpop.eup %83 }
  0xcf   :  { %v71_v22 = vmul.f32 %v84_v21, %v67_v20 }
  0xd1   :  { %v72_v23 = vsub.f32 1.0, %v71_v22 }
  0xd3   :  { %73 = vst.msk [vmem:[%s185_s2] sm:$0xff] %vm39_vm0, %v72_v23 }
  0xd4   :  { %78 = vsyncpa [#allocation5], 1 }
  0xd5   :  { %79 = vsyncpa [#allocation7], 1 }

</bundles_post_ra>
